<compile_context>
chip_gen: v6e
topology: v6e:2x2x1
jax: 0.10.0
libtpu: 0.0.40
codegen_flags: <defaults>
</compile_context>

<pallas_src>
import jax
import jax.numpy as jnp
from jax.experimental import pallas as pl
from jax.experimental.pallas import tpu as pltpu


# ~4 MiB of x per grid step (review: 2-4 MiB amortizes per-step overhead).
_X_BLOCK_BYTES_TARGET = 4 * 1024 * 1024
# 32 MiB scoped VMEM: raises v5e's 16 MiB default, matches v6e/v7x defaults,
# and stays comfortably inside v7x's 64 MiB physical VMEM.
_VMEM_LIMIT_BYTES = 32 * 1024 * 1024


def _actnorm_masked_kernel(x_ref, mask_ref, scale_ref, bias_ref, z_ref):
    # x_ref:     (1, TC, TT)
    # mask_ref:  (1, 1,  TT)  broadcast over channels (sublanes)
    # scale_ref: (1, TC, 1)   broadcast over time (lanes); scale = exp(logs)
    # bias_ref:  (1, TC, 1)
    x = x_ref[...].astype(jnp.float32)
    m = mask_ref[...].astype(jnp.float32)
    s = scale_ref[...].astype(jnp.float32)
    b = bias_ref[...].astype(jnp.float32)
    z_ref[...] = ((b + s * x) * m).astype(z_ref.dtype)


def _actnorm_nomask_kernel(x_ref, scale_ref, bias_ref, z_ref):
    # x_ref:     (TR, TT)    flattened (B*C, T) rows
    # scale_ref: (TR, 1)
    # bias_ref:  (TR, 1)
    x = x_ref[...].astype(jnp.float32)
    s = scale_ref[...].astype(jnp.float32)
    b = bias_ref[...].astype(jnp.float32)
    z_ref[...] = (b + s * x).astype(z_ref.dtype)


def _pick_t_tile(T):
    # Lane-dense tile: full T when it fits (block dim == full dim is always
    # legal), otherwise 2048 lanes (multiple of 128); partial edge blocks are
    # handled by Pallas writeback masking.
    return T if T <= 2048 else 2048


def _pick_row_tile(rows, tt, itemsize):
    # Fill the sublane dimension until the x block hits the byte budget.
    bytes_per_row = tt * itemsize
    budget_rows = max(8, (_X_BLOCK_BYTES_TARGET // max(bytes_per_row, 1)) // 8 * 8)
    return rows if rows <= budget_rows else budget_rows


def actnorm_forward(x, x_mask=None, logs=None, bias=None):
    """ActNorm forward (reverse=False, initialized). Returns (z, logdet)."""
    B, C, T = x.shape
    itemsize = jnp.dtype(x.dtype).itemsize

    # --- hoisted tiny work (computed once; XLA fuses this) -------------------
    scale = jnp.exp(logs)                               # (1, C, 1)
    sum_logs = jnp.sum(logs.astype(jnp.float32))        # scalar, f32 accum

    TT = _pick_t_tile(T)
    num_t = pl.cdiv(T, TT)

    if x_mask is None:
        # ---- no-mask fast path: no ones-mask in HBM, flatten to (B*C, T) ----
        # (also keeps sublane tiles dense when C is small / not a multiple of 8)
        logdet = sum_logs * jnp.full((B,), float(T), dtype=jnp.float32)

        rows = B * C
        x2 = x.reshape(rows, T)
        scale2 = jnp.broadcast_to(scale.reshape(1, C, 1), (B, C, 1)).reshape(rows, 1)
        bias2 = jnp.broadcast_to(bias.reshape(1, C, 1), (B, C, 1)).reshape(rows, 1)

        TR = _pick_row_tile(rows, TT, itemsize)
        grid = (num_t, pl.cdiv(rows, TR))

        z2 = pl.pallas_call(
            _actnorm_nomask_kernel,
            out_shape=jax.ShapeDtypeStruct((rows, T), x.dtype),
            grid_spec=pltpu.PrefetchScalarGridSpec(
                num_scalar_prefetch=0,
                grid=grid,
                in_specs=[
                    pl.BlockSpec((TR, TT), lambda t, r: (r, t)),   # x
                    pl.BlockSpec((TR, 1), lambda t, r: (r, 0)),    # scale
                    pl.BlockSpec((TR, 1), lambda t, r: (r, 0)),    # bias
                ],
                out_specs=pl.BlockSpec((TR, TT), lambda t, r: (r, t)),
            ),
            compiler_params=pltpu.CompilerParams(
                dimension_semantics=("parallel", "parallel"),
                vmem_limit_bytes=_VMEM_LIMIT_BYTES,
            ),
        )(x2, scale2, bias2)
        return z2.reshape(B, C, T), logdet

    # ---- masked path (3-D layout, mask broadcast over channels) -------------
    x_len = jnp.sum(x_mask.astype(jnp.float32), axis=(1, 2))    # (B,)
    logdet = sum_logs * x_len                                   # (B,)

    TC = _pick_row_tile(C, TT, itemsize)
    grid = (num_t, B, pl.cdiv(C, TC))   # largest parallel axis first (megacore)

    z = pl.pallas_call(
        _actnorm_masked_kernel,
        out_shape=jax.ShapeDtypeStruct((B, C, T), x.dtype),
        grid_spec=pltpu.PrefetchScalarGridSpec(
            num_scalar_prefetch=0,
            grid=grid,
            in_specs=[
                pl.BlockSpec((1, TC, TT), lambda t, b, c: (b, c, t)),   # x
                pl.BlockSpec((1, 1, TT), lambda t, b, c: (b, 0, t)),    # x_mask
                pl.BlockSpec((1, TC, 1), lambda t, b, c: (0, c, 0)),    # scale
                pl.BlockSpec((1, TC, 1), lambda t, b, c: (0, c, 0)),    # bias
            ],
            out_specs=pl.BlockSpec((1, TC, TT), lambda t, b, c: (b, c, t)),
        ),
        compiler_params=pltpu.CompilerParams(
            dimension_semantics=("parallel", "parallel", "parallel"),
            vmem_limit_bytes=_VMEM_LIMIT_BYTES,
        ),
    )(x, x_mask, scale, bias)

    return z, logdet


def actnorm_reference(x, x_mask, logs, bias):
    """Pure-JAX reference matching the PyTorch module (reverse=False)."""
    B, _, T = x.shape
    if x_mask is None:
        x_mask = jnp.ones((B, 1, T), dtype=x.dtype)
    x_len = jnp.sum(x_mask, axis=(1, 2))
    z = (bias + jnp.exp(logs) * x) * x_mask
    logdet = jnp.sum(logs) * x_len
    return z, logdet


if __name__ == "__main__":
    B, C, T = 2, 4, 16  # batch, channels, time

    key = jax.random.PRNGKey(0)
    kx, kl, kb = jax.random.split(key, 3)

    x = jax.random.normal(kx, (B, C, T), dtype=jnp.float32)
    # mask: first batch fully valid, second batch has last 4 frames masked out.
    lengths = jnp.array([T, T - 4], dtype=jnp.int32)
    x_mask = (jnp.arange(T)[None, None, :] < lengths[:, None, None]).astype(jnp.float32)

    # Deterministic "trained" parameters (module inits them to zeros; use small
    # nonzero values so the affine transform is actually exercised).
    logs = (0.1 * jax.random.normal(kl, (1, C, 1))).astype(jnp.float32)
    bias = (0.1 * jax.random.normal(kb, (1, C, 1))).astype(jnp.float32)

    # Masked path.
    z, logdet = actnorm_forward(x, x_mask, logs, bias)
    jax.block_until_ready((z, logdet))
    z_ref, logdet_ref = actnorm_reference(x, x_mask, logs, bias)
    assert jnp.allclose(z, z_ref, atol=1e-5, rtol=1e-5)
    assert jnp.allclose(logdet, logdet_ref, atol=1e-5, rtol=1e-5)

    # No-mask fast path (x_mask is None).
    z2, logdet2 = actnorm_forward(x, None, logs, bias)
    jax.block_until_ready((z2, logdet2))
    z2_ref, logdet2_ref = actnorm_reference(x, None, logs, bias)
    assert jnp.allclose(z2, z2_ref, atol=1e-5, rtol=1e-5)
    assert jnp.allclose(logdet2, logdet2_ref, atol=1e-5, rtol=1e-5)

    print("KERNEL_OK")
</pallas_src>

<mosaic_0001>
module attributes {stable_mosaic.version = 11 : i64} {
  func.func @_actnorm_masked_kernel(%arg0: i32, %arg1: i32, %arg2: i32, %arg3: memref<1x4x16xf32, #tpu.memory_space<vmem>>, %arg4: memref<1x1x16xf32, #tpu.memory_space<vmem>>, %arg5: memref<1x4x1xf32, #tpu.memory_space<vmem>>, %arg6: memref<1x4x1xf32, #tpu.memory_space<vmem>>, %arg7: memref<1x4x16xf32, #tpu.memory_space<vmem>>) attributes {dimension_semantics = [#tpu.dimension_semantics<parallel>, #tpu.dimension_semantics<parallel>, #tpu.dimension_semantics<parallel>], iteration_bounds = array<i64: 1, 2, 1>, scalar_prefetch = 0 : i64, scratch_operands = 0 : i64, tpu.core_type = #tpu.core_type<tc>, window_params = [{transform_indices = @transform_0, window_bounds = array<i64: 1, 4, 16>}, {transform_indices = @transform_1, window_bounds = array<i64: 1, 1, 16>}, {transform_indices = @transform_2, window_bounds = array<i64: 1, 4, 1>}, {transform_indices = @transform_3, window_bounds = array<i64: 1, 4, 1>}, {transform_indices = @transform_4, window_bounds = array<i64: 1, 4, 16>}]} {
    %c0 = arith.constant 0 : index
    %c0_0 = arith.constant 0 : index
    %c0_1 = arith.constant 0 : index
    %0 = vector.load %arg3[%c0, %c0_0, %c0_1] : memref<1x4x16xf32, #tpu.memory_space<vmem>>, vector<1x4x16xf32>
    %c0_2 = arith.constant 0 : index
    %c0_3 = arith.constant 0 : index
    %c0_4 = arith.constant 0 : index
    %1 = vector.load %arg4[%c0_2, %c0_3, %c0_4] : memref<1x1x16xf32, #tpu.memory_space<vmem>>, vector<1x1x16xf32>
    %c0_5 = arith.constant 0 : index
    %c0_6 = arith.constant 0 : index
    %c0_7 = arith.constant 0 : index
    %2 = vector.load %arg5[%c0_5, %c0_6, %c0_7] : memref<1x4x1xf32, #tpu.memory_space<vmem>>, vector<1x4x1xf32>
    %c0_8 = arith.constant 0 : index
    %c0_9 = arith.constant 0 : index
    %c0_10 = arith.constant 0 : index
    %3 = vector.load %arg6[%c0_8, %c0_9, %c0_10] : memref<1x4x1xf32, #tpu.memory_space<vmem>>, vector<1x4x1xf32>
    %4 = vector.broadcast %2 : vector<1x4x1xf32> to vector<1x4x16xf32>
    %5 = arith.mulf %4, %0 : vector<1x4x16xf32>
    %6 = vector.broadcast %3 : vector<1x4x1xf32> to vector<1x4x16xf32>
    %7 = arith.addf %6, %5 : vector<1x4x16xf32>
    %8 = vector.broadcast %1 : vector<1x1x16xf32> to vector<1x4x16xf32>
    %9 = arith.mulf %7, %8 : vector<1x4x16xf32>
    %c0_11 = arith.constant 0 : index
    %c0_12 = arith.constant 0 : index
    %c0_13 = arith.constant 0 : index
    %10 = vector.load %arg7[%c0_11, %c0_12, %c0_13] : memref<1x4x16xf32, #tpu.memory_space<vmem>>, vector<1x4x16xf32>
    tpu.vector_store %arg7[%c0_11, %c0_12, %c0_13], %9 {strides = array<i32>} : memref<1x4x16xf32, #tpu.memory_space<vmem>>, vector<1x4x16xf32>,
    return
  }
  func.func @transform_0(%arg0: i32, %arg1: i32, %arg2: i32) -> (i32, i32, i32) {
    %c0_i32 = arith.constant 0 : i32
    return %arg1, %arg2, %arg0 : i32, i32, i32
  }
  func.func @transform_1(%arg0: i32, %arg1: i32, %arg2: i32) -> (i32, i32, i32) {
    %c0_i32 = arith.constant 0 : i32
    %c0_i32_0 = arith.constant 0 : i32
    return %arg1, %c0_i32, %arg0 : i32, i32, i32
  }
  func.func @transform_2(%arg0: i32, %arg1: i32, %arg2: i32) -> (i32, i32, i32) {
    %c0_i32 = arith.constant 0 : i32
    %c0_i32_0 = arith.constant 0 : i32
    %c0_i32_1 = arith.constant 0 : i32
    return %c0_i32, %arg2, %c0_i32_0 : i32, i32, i32
  }
  func.func @transform_3(%arg0: i32, %arg1: i32, %arg2: i32) -> (i32, i32, i32) {
    %c0_i32 = arith.constant 0 : i32
    %c0_i32_0 = arith.constant 0 : i32
    %c0_i32_1 = arith.constant 0 : i32
    return %c0_i32, %arg2, %c0_i32_0 : i32, i32, i32
  }
  func.func @transform_4(%arg0: i32, %arg1: i32, %arg2: i32) -> (i32, i32, i32) {
    %c0_i32 = arith.constant 0 : i32
    return %arg1, %arg2, %arg0 : i32, i32, i32
  }
}

</mosaic_0001>

<bundles_post_ra>
// kernel: tpu_custom_call.1
= control target key start
LH: loop header
LB: loop body
LE: loop exit
PB: predicated region body
PF: predicated region fallthrough
CT: control target
= control target key end

     0   :  { %9 = vsyncpa [#allocation3], 0  ;;  %s742_s0 = inlined_call_operand.vmem [shape: f32[2,4,16], index: 0, kind: input, shape index: {}]   ;;  %s743_s1 = inlined_call_operand.vmem [shape: f32[2,1,16], index: 1, kind: input, shape index: {}]   ;;  %s744_s2 = inlined_call_operand.vmem [shape: f32[1,4,1], index: 2, kind: input, shape index: {}]   ;;  %s745_s3 = inlined_call_operand.vmem [shape: f32[1,4,1], index: 3, kind: input, shape index: {}]   ;;  %s746_s4 = inlined_call_operand.hbm [shape: f32[2,4,16], index: 4, kind: output, shape index: {}]  }
   0x1   :  { %11 = vsyncpa [#allocation3 + $0x1], 0  ;;  %s634_s15 = smov 0   ;;  %s636_s16 = smov 0  }
   0x2   :  { %s638_s17 = smov 0   ;;  %s640_s18 = smov 0  }
   0x3   :  { %s642_s19 = smov 0   ;;  %s644_s20 = smov 0  }
   0x4 LB: > { %s458_s21 = sadd.s32 4294967295, %s605_s20   ;;  %s459_s22 = sadd.s32 4294967294, %s605_s20   ;;  %s605_s20 = sphi %s644_s20, %s17_s20   ;;  %s601_s19 = sphi %s642_s19, %s753_s19   ;;  %s597_s18 = sphi %s640_s18, %s752_s18   ;;  %s593_s17 = sphi %s638_s17, %s751_s17   ;;  %s589_s16 = sphi %s636_s16, %s750_s16   ;;  %s585_s15 = sphi %s634_s15, %s749_s15  }
   0x5   : > { %s32_s23 = sadd.s32 1, %s601_s19  ;;  %s157_s24 = sadd.s32 1, %s593_s17 }
   0x6   : > { %p34_p0 = scmp.ge.s32.totalorder %s32_s23, 2  ;;  %p167_p1 = scmp.ne.s32.totalorder %s593_s17, %s589_s16 }
   0x7   : > { %p168_p2 = scmp.eq.s32.totalorder %s458_s21, 1  ;;  %p173_p3 = scmp.ne.s32.totalorder %s589_s16, %s585_s15 }
   0x8   : > { %s755_s23 = smov (%p34_p0, %s32_s23), 0  ;;  %p174_p5 = scmp.eq.s32.totalorder %s459_s22, 1 }
   0x9   : > { %p674_p4 = por %p168_p2, %p167_p1  ;;  %s150_s26 = ssub.s32 %s601_s19, %s755_s23 }
   0xa   : > { %p464_p6 = scmp.ge.s32.totalorder %s605_s20, 1  ;;  %p155_p7 = scmp.eq.s32.totalorder %s150_s26, 0 }
   0xb   : > { %p681_p8 = por %p174_p5, %p173_p3  ;;  %p228_p9 = scmp.lt.s32.totalorder %s605_s20, 3 }
   0xc   : > { %s687_s28 = scalar_select %p155_p7, %s593_s17, %s157_s24  }
   0xd   : > { %p229_p10 = pnand %p464_p6, %p228_p9 }
   0xe   : > { %p273_p11 = scmp.lt.s32.totalorder (!%p229_p10), %s597_s18, 1  ;;  %s270_s9 = sand.u32 (!%p229_p10), 1, %s589_s16  }
   0xf   : > { %232 = sbr.rel (%p229_p10) target bundleno = 167 (0xa7), region = 36  ;;  %s465_s13 = sshll.u32 (!%p229_p10), %s270_s9, 2 }
  0x10   : > { %s469_s24 = sshll.u32 (!%p229_p10), %s597_s18, 6  ;;  %s272_s26 = scalar_lea.vmem (!%p229_p10), [#allocation2], %s465_s13 }
  0x11   : > { %s338_s29 = sshll.u32 (!%p229_p10), %s272_s26, 4  ;;  %s336_s6 = scalar_lea.hbm (!%p229_p10), %s746_s4, %s469_s24  ;;  %s339_s29 = int_to_ptr.vmem [resolvable:$true] %s338_s29 }
  0x12   : > { %s529_s10 = scalar_lea.vmem (!%p229_p10), %s339_s29, 64 }
  0x13   : > { %p530_p12 = scmp.ne.s32.totalorder (!%p229_p10), %s339_s29, %s529_s10 }
  0x14   : > { %v299_v0 = vld [vmem:[%s744_s2] sm:$0xf]  ;;  %v607_v1 = vmov 0   ;;  %s274_s7 = scalar_select %p273_p11, %s597_s18, 1  ;;  %vm320_vm0 = vcmask 125952  }
  0x15   : > { %528 = vset.pattern.permute.xlu0 %v607_v1  ;;  %v300_v2 = vld [vmem:[%s745_s3] sm:$0xf]  ;;  %p531_p13 = pnand %p530_p12, %p674_p4 }
  0x16   : > { %303 = vperm.xlu0 %528, %v299_v0   ;;  %s466_s8 = sshll.u32 %s274_s7, 2  ;;  %s288_s22 = scalar_lea.vmem %s743_s1, %s274_s7 }
  0x17   : > { %s282_s12 = scalar_lea.vmem %s742_s0, %s466_s8  ;;  %v467_v7 = vld [vmem:[%s288_s22] ss:$0 sm:$0xff]  ;;  %s323_s8 = scalar_lea.sflag [#allocation3], %s270_s9 }
  0x18   : > { %v297_v4 = vld [vmem:[%s282_s12] sm:$0xf]  ;;  %p532_p0 = pneg %p531_p13  ;;  %s608_s7 = smov [#allocation2]  }
  0x19   : > { %s533_s11 = sshll.u32 %s608_s7, 4  ;;  %s534_s11 = int_to_ptr.vmem [resolvable:$false] %s533_s11 }
  0x1a   : > { %309 = vperm.xlu0 %528, %v300_v2   ;;  %s535_s18 = scalar_lea.vmem %s534_s11, 128  ;;  %p536_p1 = scmp.lt.s32.totalorder %s339_s29, %s534_s11 }
  0x1b   : > { %p537_p2 = scmp.lt.s32.totalorder %s535_s18, %s529_s10 }
  0x1d   : > { %p538_p3 = por %p537_p2, %p536_p1 }
  0x1f   : > { %p539_p5 = pnand %p538_p3, %p532_p0 }
  0x91   : > { %v304_v3 = vpop.permute.xlu0 %303 }
  0x92   : > { %v306_v5 = vmul.f32 %v304_v3, %v297_v4 }
  0x95   : > { %v310_v6 = vpop.permute.xlu0 %309 }
  0x96   : > { %v312_v8 = vadd.f32 %v310_v6, %v306_v5 }
  0x98   : > { %v319_v9 = vmul.f32 %v467_v7, %v312_v8 }
  0x9a   : > { %321 = vst.msk [vmem:[%s272_s26] sm:$0xf] %vm320_vm0, %v319_v9 }
  0x9b   : > { %542 = shalt.err (!%p539_p5)
}
  0x9c   : > { %s543_s12 = scalar_lea.hbm %s336_s6, 64  ;;  %s547_s14 = scalar_lea.hbm %s746_s4, 128 }
  0x9d   : > { %p544_p6 = scmp.ne.s32.totalorder %s336_s6, %s543_s12  ;;  %p548_p10 = scmp.lt.s32.totalorder %s336_s6, %s746_s4 }
  0x9e   : > { %p549_p11 = scmp.lt.s32.totalorder %s547_s14, %s543_s12 }
  0x9f   : > { %p545_p7 = pnand %p544_p6, %p674_p4 }
  0xa0   : > { %p550_p12 = por %p549_p11, %p548_p10 }
  0xa1   : > { %p546_p9 = pneg %p545_p7 }
  0xa3   : > { %p551_p13 = pnand %p550_p12, %p546_p9 }
  0xa5   : > { %554 = shalt.err (!%p551_p13)
}
  0xa6   : > { %472 = dma.vmem_to_hbm [thread:$0]  (%p674_p4), %s339_s29, 64, %s336_s6, %s323_s8  }
  0xa7 PF: > { %p478_p0 = scmp.ge.s32.totalorder %s605_s20, 2  ;;  %s350_s24 = sand.u32 1, %s585_s15  }
  0xa8   : > { %s351_s26 = scalar_lea.sflag [#allocation3], %s350_s24 }
  0xa9   : > { %p475_p1 = pnand %p478_p0, %p681_p8 }
  0xab   : > { %p476_p2 = pneg %p475_p1 }
  0xad   : > { %580 = dma.done.wait (%p476_p2), %s351_s26, 64  }
  0xae   : > { %582 = vsyncadd (%p476_p2), %s351_s26, 4294967232  ;;  %s17_s20 = sadd.s32 1, %s605_s20   ;;  %s749_s15 = smov %s589_s16 }
  0xaf   : > { %p14_p3 = scmp.ge.s32.totalorder %s17_s20, 4   ;;  %s750_s16 = smov %s593_s17 }
  0xb0   : > { %s751_s17 = smov %s687_s28  ;;  %s752_s18 = smov %s601_s19 }
  0xb1   : > { %s753_s19 = smov %s755_s23  ;;  %16 = sbr.rel (!%p14_p3) target bundleno = 4 (0x4), region = 80 }
  0xb6   :  { %356 = vsyncpa [#allocation3], 1 }
  0xb7   :  { %358 = vsyncpa [#allocation3 + $0x1], 1 }

</bundles_post_ra>
